<compile_context>
chip_gen: v7x
topology: tpu7x:2x2x1
jax: 0.10.0
libtpu: 0.0.40
codegen_flags: <defaults>
</compile_context>

<pallas_src>
import functools
from types import SimpleNamespace

import numpy as np
import jax
import jax.numpy as jnp
from jax.experimental import pallas as pl
from jax.experimental.pallas import tpu as pltpu

_NEG_BIG = -1e30  # finite "-inf" sentinel for masked columns


# ----------------------------------------------------------------------------
# Pallas kernel: `_contrastive` hot path (single pass per row block)
# ----------------------------------------------------------------------------
def _contrastive_kernel(fr_ref, fcT_ref, lr_ref, lc_ref, out_ref,
                        *, inv_t, t_over_bt, t_r):
    i = pl.program_id(0)

    fr = fr_ref[...]           # (TR, D)  bf16 row features
    fcT = fcT_ref[...]         # (D, N)   bf16 transposed contrast features (resident)
    lr = lr_ref[...]           # (TR, 1)  f32 row labels, -1 on padding
    lc = lc_ref[...]           # (1, N)   f32 col labels, -1 on padding (resident)

    # Pre-scale the small row tile by 1/T (avoids an N^2 divide).  MXU in bf16,
    # f32 accumulation; all softmax math stays f32.
    frs = fr * inv_t
    logits = jnp.dot(frs, fcT, preferred_element_type=jnp.float32)   # (TR, N)

    col_valid = lc > -0.5
    row_valid = lr > -0.5
    same = lr == lc

    # exact diagonal (self) mask via global row / column ids
    row_ids = jax.lax.broadcasted_iota(jnp.int32, logits.shape, 0) + i * t_r
    col_ids = jax.lax.broadcasted_iota(jnp.int32, logits.shape, 1)
    diag = row_ids == col_ids

    # TODO(synk): the exp / select math could run in bf16 on v6e/v7x (bf16
    # VALU/EUP); kept f32 for tolerance and v5e portability.
    masked = jnp.where(col_valid, logits, _NEG_BIG)
    m = jnp.max(masked, axis=1, keepdims=True)            # row max (valid cols)
    e = jnp.exp(masked - m)                                # padded cols -> 0
    neg_e = jnp.where(same, 0.0, e)                        # negatives only
    nsum = jnp.sum(neg_e, axis=1, keepdims=True)

    lshift = logits - m
    lp = lshift - jnp.log(jnp.exp(lshift) + nsum)          # log-prob per pair

    pos_mask = jnp.logical_and(jnp.logical_and(same, col_valid),
                               jnp.logical_not(diag))
    psum = jnp.sum(jnp.where(pos_mask, lp, 0.0), axis=1, keepdims=True)
    pos_cnt = jnp.sum(pos_mask.astype(jnp.float32), axis=1, keepdims=True)

    # NOTE: pos_cnt can be 0 when a class is sampled with a single view — the
    # PyTorch reference has the same div-by-zero hazard; padded rows are zeroed
    # by the row_valid select below (where() does not propagate the NaN).
    mlpp = psum / pos_cnt
    out_ref[...] = jnp.where(row_valid, (-t_over_bt) * mlpp, 0.0)


def _round_up(x, m):
    return ((x + m - 1) // m) * m


@functools.partial(jax.jit, static_argnames=("temperature", "base_temperature"))
def _contrastive_device(feats_, labels_, *, temperature, base_temperature):
    """feats_: (A, V, D) f32, labels_: (A,) f32 -> scalar loss (reference `_contrastive`)."""
    a, v, d = feats_.shape
    n = a * v
    # contrast_feature = cat(unbind(feats_, dim=1), dim=0) -> view-major rows
    contrast = jnp.transpose(feats_, (1, 0, 2)).reshape(n, d).astype(jnp.bfloat16)
    labels_rep = jnp.tile(labels_.astype(jnp.float32), v)

    # ---- tile / padding selection -------------------------------------------
    n_pad0 = _round_up(n, 128)
    if n_pad0 <= 256:
        t_r = 128          # >=2 row blocks as soon as n_pad0 == 256 (v7x megacore)
    elif n_pad0 <= 2048:
        t_r = 256
    else:
        t_r = 128          # bound the (TR, N) f32 temporaries for large N
    n_pad = _round_up(n, t_r)
    n_blocks = n_pad // t_r
    d_pad = _round_up(d, 8)  # no 128-padding of the feature dim (no wasted K/DMA)

    feats_pad = jnp.zeros((n_pad, d_pad), jnp.bfloat16).at[:n, :d].set(contrast)
    feats_t = jnp.zeros((d_pad, n_pad), jnp.bfloat16).at[:d, :n].set(contrast.T)
    lab_col = jnp.full((1, n_pad), -1.0, jnp.float32).at[0, :n].set(labels_rep)
    lab_row = lab_col.reshape(n_pad, 1)

    kernel = functools.partial(_contrastive_kernel,
                               inv_t=float(1.0 / temperature),
                               t_over_bt=float(temperature / base_temperature),
                               t_r=t_r)

    # generous VMEM estimate: ~8 live (TR, N) f32 slabs + resident features;
    # only raise the scoped limit when the default would not cover it.
    est = (8 * t_r * n_pad * 4 + 2 * d_pad * n_pad * 2
           + 4 * t_r * d_pad * 2 + (2 << 20))
    vmem_limit = int(min(est, 100 << 20)) if est > (30 << 20) else None
    # TODO(synk): for N far beyond max_samples (logits slab no longer fitting
    # VMEM) a streamed two-sweep path would be required; unreachable here since
    # the sampler bounds N by max_samples.

    per_row = pl.pallas_call(
        kernel,
        out_shape=jax.ShapeDtypeStruct((n_pad, 1), jnp.float32),
        grid=(n_blocks,),
        in_specs=[
            pl.BlockSpec((t_r, d_pad), lambda i: (i, 0)),     # row features (streamed)
            pl.BlockSpec((d_pad, n_pad), lambda i: (0, 0)),   # contrast^T (resident)
            pl.BlockSpec((t_r, 1), lambda i: (i, 0)),         # row labels
            pl.BlockSpec((1, n_pad), lambda i: (0, 0)),       # column labels (resident)
        ],
        out_specs=pl.BlockSpec((t_r, 1), lambda i: (i, 0)),
        compiler_params=pltpu.CompilerParams(
            dimension_semantics=("parallel",),
            vmem_limit_bytes=vmem_limit),
    )(feats_pad, feats_t, lab_row, lab_col)

    return jnp.sum(per_row) / jnp.float32(n)


# ----------------------------------------------------------------------------
# Host-side glue: label interpolation + hard-anchor index sampling (NumPy only)
# ----------------------------------------------------------------------------
def _nearest_interp_labels_np(labels_np, out_h, out_w):
    """torch F.interpolate(mode='nearest') on an integer label map (host)."""
    b, h, w = labels_np.shape
    rows = (np.arange(out_h) * h) // out_h
    cols = (np.arange(out_w) * w) // out_w
    return labels_np[:, rows][:, :, cols]


# TODO(synk): the randperm / dynamic-shape hard-anchor sampling has no clean
# static-shape Pallas equivalent; index selection runs on host (small label /
# predict maps only), the feature gather stays on device.
def _hard_anchor_sampling_indices(y_hat, y, max_samples, max_views,
                                  ignore_label=(0,), seed=0):
    rng = np.random.RandomState(seed)
    batch_size, n_pix = y_hat.shape
    classes, total_classes = [], 0
    for ii in range(batch_size):
        this_y = y_hat[ii]
        uniq = np.unique(this_y)
        cls = [int(cc) for cc in uniq if int(cc) not in ignore_label]
        cls = [cc for cc in cls if int((this_y == cc).sum()) > max_views]
        classes.append(cls)
        total_classes += len(cls)
    if total_classes == 0:
        return None, None
    n_view = min(max_samples // total_classes, max_views)

    idx_ = np.zeros((total_classes, n_view), dtype=np.int32)
    y_ = np.zeros((total_classes,), dtype=np.float32)
    ptr = 0
    for ii in range(batch_size):
        this_y_hat, this_y = y_hat[ii], y[ii]
        for cls_id in classes[ii]:
            hard = np.nonzero((this_y_hat == cls_id) & (this_y != cls_id))[0]
            easy = np.nonzero((this_y_hat == cls_id) & (this_y == cls_id))[0]
            num_hard, num_easy = len(hard), len(easy)
            if num_hard >= n_view / 2 and num_easy >= n_view / 2:
                num_hard_keep = n_view // 2
                num_easy_keep = n_view - num_hard_keep
            elif num_hard >= n_view / 2:
                num_easy_keep = num_easy
                num_hard_keep = n_view - num_easy_keep
            elif num_easy >= n_view / 2:
                num_hard_keep = num_hard
                num_easy_keep = n_view - num_hard_keep
            else:
                raise Exception("this should never be touched")
            hard = hard[rng.permutation(num_hard)[:num_hard_keep]]
            easy = easy[rng.permutation(num_easy)[:num_easy_keep]]
            sel = np.concatenate([hard, easy], axis=0)
            idx_[ptr] = ii * n_pix + sel
            y_[ptr] = cls_id
            ptr += 1
    return idx_, y_


def pixel_contrast_loss(feats, labels, predict, args):
    """feats: (B, C, H, W) f32; labels: (B, Hl, Wl) int; predict: (B, H, W) int."""
    b, c, h, w = feats.shape
    # label / predict maps are tiny: interpolate + sample fully on host so no
    # device round-trip sits on the critical path.
    labels_np = np.asarray(labels)
    predict_np = np.asarray(predict)
    labels_i = _nearest_interp_labels_np(labels_np, h, w)          # (B, H, W)
    labels_flat = labels_i.reshape(b, -1)
    predict_flat = predict_np.reshape(b, -1)

    idx_, labels_ = _hard_anchor_sampling_indices(
        labels_flat, predict_flat, args.max_samples, args.max_views,
        ignore_label=(0,), seed=0)
    if idx_ is None:
        return None, None, None

    # gather sampled features on device — only indices/labels cross host boundary
    feats_flat = jnp.transpose(feats, (0, 2, 3, 1)).reshape(b * h * w, c)
    feats_ = jnp.take(feats_flat, jnp.asarray(idx_), axis=0)        # (total, n_view, C)
    labels_j = jnp.asarray(labels_)

    loss = _contrastive_device(feats_, labels_j,
                               temperature=float(args.temperature),
                               base_temperature=float(args.base_temperature))
    return loss, feats_, labels_


# ----------------------------------------------------------------------------
# Pure-numpy reference of _contrastive (correctness check)
# ----------------------------------------------------------------------------
def _contrastive_ref(feats_, labels_, T, bT):
    a, v, d = feats_.shape
    contrast = np.concatenate([feats_[:, vv, :] for vv in range(v)], axis=0)
    lab = labels_.reshape(-1, 1)
    mask = (lab == lab.T).astype(np.float32)
    adc = (contrast @ contrast.T) / T
    logits = adc - adc.max(axis=1, keepdims=True)
    mask = np.tile(mask, (v, v))
    neg_mask = 1.0 - mask
    logits_mask = 1.0 - np.eye(a * v, dtype=np.float32)
    mask = mask * logits_mask
    neg_logits = (np.exp(logits) * neg_mask).sum(1, keepdims=True)
    exp_logits = np.exp(logits)
    log_prob = logits - np.log(exp_logits + neg_logits)
    mlpp = (mask * log_prob).sum(1) / mask.sum(1)
    return float((-(T / bT) * mlpp).mean())


if __name__ == "__main__":
    args = SimpleNamespace(temperature=0.1, base_temperature=0.07,
                           max_samples=128, max_views=16)

    key = jax.random.PRNGKey(0)
    k_f, k_l, k_p = jax.random.split(key, 3)
    B, C, H, W = 2, 32, 16, 16
    feats = 0.1 * jax.random.normal(k_f, (B, C, H, W), dtype=jnp.float32)
    labels = jax.random.randint(k_l, (B, 32, 32), 0, 4, dtype=jnp.int32)   # class 0 ignored
    predict = jax.random.randint(k_p, (B, H, W), 0, 4, dtype=jnp.int32)

    loss, feats_, labels_ = pixel_contrast_loss(feats, labels, predict, args)
    loss = jax.block_until_ready(loss)

    ref = _contrastive_ref(np.asarray(feats_, np.float32),
                           np.asarray(labels_, np.float32),
                           args.temperature, args.base_temperature)
    np.testing.assert_allclose(float(loss), ref, rtol=5e-3, atol=5e-3)
    print("KERNEL_OK")
</pallas_src>

<mosaic_0001>
module attributes {stable_mosaic.version = 11 : i64} {
  func.func @_contrastive_kernel(%arg0: i32, %arg1: memref<128x32xbf16, #tpu.memory_space<vmem>>, %arg2: memref<32x128xbf16, #tpu.memory_space<vmem>>, %arg3: memref<128x1xf32, #tpu.memory_space<vmem>>, %arg4: memref<1x128xf32, #tpu.memory_space<vmem>>, %arg5: memref<128x1xf32, #tpu.memory_space<vmem>>) attributes {dimension_semantics = [#tpu.dimension_semantics<parallel>], iteration_bounds = array<i64: 1>, scalar_prefetch = 0 : i64, scratch_operands = 0 : i64, tpu.core_type = #tpu.core_type<tc>, window_params = [{transform_indices = @transform_0, window_bounds = array<i64: 128, 32>}, {pipeline_mode = #tpu.pipeline_mode<synchronous>, transform_indices = @transform_1, window_bounds = array<i64: 32, 128>}, {transform_indices = @transform_2, window_bounds = array<i64: 128, 1>}, {pipeline_mode = #tpu.pipeline_mode<synchronous>, transform_indices = @transform_3, window_bounds = array<i64: 1, 128>}, {transform_indices = @transform_4, window_bounds = array<i64: 128, 1>}]} {
    %c0 = arith.constant 0 : index
    %c0_0 = arith.constant 0 : index
    %0 = vector.load %arg1[%c0, %c0_0] : memref<128x32xbf16, #tpu.memory_space<vmem>>, vector<128x32xbf16>
    %c0_1 = arith.constant 0 : index
    %c0_2 = arith.constant 0 : index
    %1 = vector.load %arg2[%c0_1, %c0_2] : memref<32x128xbf16, #tpu.memory_space<vmem>>, vector<32x128xbf16>
    %c0_3 = arith.constant 0 : index
    %c0_4 = arith.constant 0 : index
    %2 = vector.load %arg3[%c0_3, %c0_4] : memref<128x1xf32, #tpu.memory_space<vmem>>, vector<128x1xf32>
    %c0_5 = arith.constant 0 : index
    %c0_6 = arith.constant 0 : index
    %3 = vector.load %arg4[%c0_5, %c0_6] : memref<1x128xf32, #tpu.memory_space<vmem>>, vector<1x128xf32>
    %cst = arith.constant 1.000000e+01 : bf16
    %4 = vector.broadcast %cst : bf16 to vector<128x32xbf16>
    %5 = arith.mulf %0, %4 : vector<128x32xbf16>
    %cst_7 = arith.constant dense<0.000000e+00> : vector<128x128xf32>
    %6 = tpu.matmul %5, %1, %cst_7 {dimension_numbers = #tpu.dot_dimension_numbers<[1], [0], [0], [1], [0, 0, 1, 1], [], []>} : vector<128x32xbf16>, vector<32x128xbf16>, vector<128x128xf32> -> vector<128x128xf32>
    %cst_8 = arith.constant -5.000000e-01 : f32
    %7 = vector.broadcast %cst_8 : f32 to vector<1x128xf32>
    %8 = arith.cmpf ogt, %3, %7 : vector<1x128xf32>
    %cst_9 = arith.constant -5.000000e-01 : f32
    %9 = vector.broadcast %cst_9 : f32 to vector<128x1xf32>
    %10 = arith.cmpf ogt, %2, %9 : vector<128x1xf32>
    %11 = vector.broadcast %2 : vector<128x1xf32> to vector<128x128xf32>
    %12 = vector.broadcast %3 : vector<1x128xf32> to vector<128x128xf32>
    %13 = arith.cmpf oeq, %11, %12 : vector<128x128xf32>
    %14 = tpu.iota {dimensions = array<i32: 0>} : vector<128x128xi32>
    %c128_i32 = arith.constant 128 : i32
    %15 = arith.muli %arg0, %c128_i32 : i32
    %16 = vector.broadcast %15 : i32 to vector<128x128xi32>
    %17 = arith.addi %14, %16 : vector<128x128xi32>
    %18 = tpu.iota {dimensions = array<i32: 1>} : vector<128x128xi32>
    %19 = arith.cmpi eq, %17, %18 : vector<128x128xi32>
    %cst_10 = arith.constant -1.000000e+30 : f32
    %20 = vector.shape_cast %8 : vector<1x128xi1> to vector<1x128xi1>
    %21 = vector.broadcast %20 : vector<1x128xi1> to vector<128x128xi1>
    %22 = vector.broadcast %cst_10 : f32 to vector<128x128xf32>
    %23 = arith.select %21, %6, %22 : vector<128x128xi1>, vector<128x128xf32>
    %cst_11 = arith.constant dense<0xFF800000> : vector<128xf32>
    %24 = vector.multi_reduction <maximumf>, %23, %cst_11 [1] : vector<128x128xf32> to vector<128xf32>
    %25 = vector.shape_cast %24 : vector<128xf32> to vector<128x1xf32>
    %26 = vector.broadcast %25 : vector<128x1xf32> to vector<128x128xf32>
    %27 = arith.subf %23, %26 : vector<128x128xf32>
    %28 = math.exp %27 : vector<128x128xf32>
    %cst_12 = arith.constant 0.000000e+00 : f32
    %29 = vector.broadcast %cst_12 : f32 to vector<128x128xf32>
    %30 = arith.select %13, %29, %28 : vector<128x128xi1>, vector<128x128xf32>
    %cst_13 = arith.constant dense<0.000000e+00> : vector<128xf32>
    %31 = vector.multi_reduction <add>, %30, %cst_13 [1] : vector<128x128xf32> to vector<128xf32>
    %32 = vector.shape_cast %31 : vector<128xf32> to vector<128x1xf32>
    %33 = vector.broadcast %25 : vector<128x1xf32> to vector<128x128xf32>
    %34 = arith.subf %6, %33 : vector<128x128xf32>
    %35 = math.exp %34 : vector<128x128xf32>
    %36 = vector.broadcast %32 : vector<128x1xf32> to vector<128x128xf32>
    %37 = arith.addf %35, %36 : vector<128x128xf32>
    %38 = math.log %37 : vector<128x128xf32>
    %39 = arith.subf %34, %38 : vector<128x128xf32>
    %40 = vector.broadcast %8 : vector<1x128xi1> to vector<128x128xi1>
    %41 = arith.andi %13, %40 : vector<128x128xi1>
    %cst_14 = arith.constant dense<true> : vector<128x128xi1>
    %42 = arith.xori %19, %cst_14 : vector<128x128xi1>
    %43 = arith.andi %41, %42 : vector<128x128xi1>
    %cst_15 = arith.constant 0.000000e+00 : f32
    %44 = vector.broadcast %cst_15 : f32 to vector<128x128xf32>
    %45 = arith.select %43, %39, %44 : vector<128x128xi1>, vector<128x128xf32>
    %cst_16 = arith.constant dense<0.000000e+00> : vector<128xf32>
    %46 = vector.multi_reduction <add>, %45, %cst_16 [1] : vector<128x128xf32> to vector<128xf32>
    %47 = vector.shape_cast %46 : vector<128xf32> to vector<128x1xf32>
    %48 = arith.extui %43 : vector<128x128xi1> to vector<128x128xi32>
    %49 = arith.sitofp %48 : vector<128x128xi32> to vector<128x128xf32>
    %cst_17 = arith.constant dense<0.000000e+00> : vector<128xf32>
    %50 = vector.multi_reduction <add>, %49, %cst_17 [1] : vector<128x128xf32> to vector<128xf32>
    %51 = vector.shape_cast %50 : vector<128xf32> to vector<128x1xf32>
    %52 = arith.divf %47, %51 : vector<128x1xf32>
    %cst_18 = arith.constant -1.42857146 : f32
    %53 = vector.broadcast %cst_18 : f32 to vector<128x1xf32>
    %54 = arith.mulf %53, %52 : vector<128x1xf32>
    %cst_19 = arith.constant 0.000000e+00 : f32
    %55 = vector.broadcast %cst_19 : f32 to vector<128x1xf32>
    %56 = arith.select %10, %54, %55 : vector<128x1xi1>, vector<128x1xf32>
    %c0_20 = arith.constant 0 : index
    %c0_21 = arith.constant 0 : index
    %57 = vector.load %arg5[%c0_20, %c0_21] : memref<128x1xf32, #tpu.memory_space<vmem>>, vector<128x1xf32>
    tpu.vector_store %arg5[%c0_20, %c0_21], %56 {strides = array<i32>} : memref<128x1xf32, #tpu.memory_space<vmem>>, vector<128x1xf32>,
    return
  }
  func.func @transform_0(%arg0: i32) -> (i32, i32) {
    %c0_i32 = arith.constant 0 : i32
    %c0_i32_0 = arith.constant 0 : i32
    return %arg0, %c0_i32 : i32, i32
  }
  func.func @transform_1(%arg0: i32) -> (i32, i32) {
    %c0_i32 = arith.constant 0 : i32
    %c0_i32_0 = arith.constant 0 : i32
    %c0_i32_1 = arith.constant 0 : i32
    return %c0_i32, %c0_i32_0 : i32, i32
  }
  func.func @transform_2(%arg0: i32) -> (i32, i32) {
    %c0_i32 = arith.constant 0 : i32
    %c0_i32_0 = arith.constant 0 : i32
    return %arg0, %c0_i32 : i32, i32
  }
  func.func @transform_3(%arg0: i32) -> (i32, i32) {
    %c0_i32 = arith.constant 0 : i32
    %c0_i32_0 = arith.constant 0 : i32
    %c0_i32_1 = arith.constant 0 : i32
    return %c0_i32, %c0_i32_0 : i32, i32
  }
  func.func @transform_4(%arg0: i32) -> (i32, i32) {
    %c0_i32 = arith.constant 0 : i32
    %c0_i32_0 = arith.constant 0 : i32
    return %arg0, %c0_i32 : i32, i32
  }
}

</mosaic_0001>

<bundles_post_ra>
// kernel: _contrastive_device.1
= control target key start
LH: loop header
LB: loop body
LE: loop exit
PB: predicated region body
PF: predicated region fallthrough
CT: control target
= control target key end

     0   :  { %v344_v0 = vlaneseq  ;;  %vm124_vm0 = vcmask 261120   ;;  %v1144_v2 = vmov 0   ;;  %s2255_s1 = inlined_call_operand.vmem [shape: bf16[32,128], index: 1, kind: input, shape index: {}]   ;;  %s2256_s0 = inlined_call_operand.vmem [shape: bf16[128,32], index: 0, kind: input, shape index: {}]   ;;  %s2257_s2 = inlined_call_operand.vmem [shape: f32[128,1], index: 2, kind: input, shape index: {}]   ;;  %s2258_s3 = inlined_call_operand.vmem [shape: f32[1,128], index: 3, kind: input, shape index: {}]   ;;  %s2259_s4 = inlined_call_operand.vmem [shape: f32[128,1], index: 4, kind: output, shape index: {}]  }
   0x1   :  { %v998_v1 = vld [vmem:[%s2255_s1] sm:$0xff]   ;;  %997 = vset.pattern.permute.xlu1 %v1144_v2  ;;  %996 = vset.pattern.permute.xlu0 %v1144_v2  ;;  %v999_v3 = vld [vmem:[%s2255_s1 + $0x8] sm:$0xff]   ;;  %v23_v23 = vld [vmem:[%s2256_s0 + $0x10] sm:$0xf] }
   0x2   :  { %v1181_v4 = vshrl.u32 %v344_v0, 7  ;;  %969 = vmatprep.subr.bf16.mxu0 %v998_v1  ;;  %989 = vmatprep.subr.bf16.mxu1 %v998_v1  ;;  %v19_v5 = vld [vmem:[%s2256_s0] sm:$0xf]  ;;  %v20_v6 = vld [vmem:[%s2256_s0 + $0x4] sm:$0xf]  ;;  %v40_v43 = vld [vmem:[%s2257_s2 + $0x8] sm:$0xff] }
   0x3   :  { %v27_v7 = vld [vmem:[%s2256_s0 + $0x20] sm:$0xf]  ;;  %970 = vmatpush3.bf16.msra.mxu0 %v998_v1  ;;  %991 = vmatpush3.bf16.msra.mxu1 %v998_v1  ;;  %v56_v8 = vmul.bf16 1092632864, %v19_v5  ;;  %v57_v9 = vmul.bf16 1092632864, %v20_v6 }
   0x4   :  { %v28_v10 = vld [vmem:[%s2256_s0 + $0x24] sm:$0xf]  ;;  %971 = vmatprep.subr.bf16.mxu0 %v999_v3  ;;  %990 = vmatprep.subr.bf16.mxu1 %v999_v3  ;;  %v64_v11 = vmul.bf16 1092632864, %v27_v7  ;;  %v21_v13 = vld [vmem:[%s2256_s0 + $0x8] sm:$0xf] }
   0x5   :  { %v65_v12 = vmul.bf16 1092632864, %v28_v10  ;;  %v925_v14 = vcombine.low %v56_v8, %v57_v9  ;;  %v22_v15 = vld [vmem:[%s2256_s0 + $0xc] sm:$0xf]  ;;  %v58_v16 = vmul.bf16 1092632864, %v21_v13  ;;  %270 = vperm.xlu1 %997, %v40_v43  }
   0x6   :  { %v29_v17 = vld [vmem:[%s2256_s0 + $0x28] sm:$0xf]  ;;  %v59_v19 = vmul.bf16 1092632864, %v22_v15  ;;  %v30_v20 = vld [vmem:[%s2256_s0 + $0x2c] sm:$0xf] }
   0x7   :  { %v929_v18 = vcombine.low %v64_v11, %v65_v12  ;;  %v66_v21 = vmul.bf16 1092632864, %v29_v17  ;;  %972 = vmatpush3.bf16.msra.mxu0 %v999_v3  ;;  %992 = vmatpush3.bf16.msra.mxu1 %v999_v3  ;;  %v67_v22 = vmul.bf16 1092632864, %v30_v20  ;;  %v24_v24 = vld [vmem:[%s2256_s0 + $0x14] sm:$0xf] }
   0x8   :  { %973 = vmatprep.mubr.msk.bf16.mxu0 %vm124_vm0, %v925_v14  ;;  %v926_v25 = vcombine.low %v58_v16, %v59_v19  ;;  %v60_v26 = vmul.bf16 1092632864, %v23_v23  ;;  %v61_v27 = vmul.bf16 1092632864, %v24_v24  ;;  %v25_v28 = vld [vmem:[%s2256_s0 + $0x18] sm:$0xf] }
   0x9   :  { %981 = vmatprep.mubr.msk.bf16.mxu1 %vm124_vm0, %v929_v18  ;;  %v930_v29 = vcombine.low %v66_v21, %v67_v22  ;;  %v26_v30 = vld [vmem:[%s2256_s0 + $0x1c] sm:$0xf]  ;;  %v62_v31 = vmul.bf16 1092632864, %v25_v28  ;;  %v31_v32 = vld [vmem:[%s2256_s0 + $0x30] sm:$0xf] }
   0xa   :  { %974 = vmatmul.mubr.msk.bf16.vlgmr.msra.gmra.mrb[0].mxu0 %vm124_vm0, %v926_v25  ;;  %v927_v33 = vcombine.low %v60_v26, %v61_v27  ;;  %v63_v34 = vmul.bf16 1092632864, %v26_v30  ;;  %v32_v35 = vld [vmem:[%s2256_s0 + $0x34] sm:$0xf]  ;;  %v68_v36 = vmul.bf16 1092632864, %v31_v32 }
   0xb   :  { %982 = vmatmul.mubr.msk.bf16.vlgmr.msra.gmra.mrb[0].mxu1 %vm124_vm0, %v930_v29  ;;  %v69_v37 = vmul.bf16 1092632864, %v32_v35  ;;  %v33_v38 = vld [vmem:[%s2256_s0 + $0x38] sm:$0xf]  ;;  %v34_v39 = vld [vmem:[%s2256_s0 + $0x3c] sm:$0xf] }
   0xc   :  { %977 = vmatprep.mubr.msk.bf16.mxu0 %vm124_vm0, %v927_v33  ;;  %v70_v40 = vmul.bf16 1092632864, %v33_v38  ;;  %v71_v41 = vmul.bf16 1092632864, %v34_v39  ;;  %v346_v42 = vsub.s32 0, %v1181_v4  ;;  %v928_v46 = vcombine.low %v62_v31, %v63_v34  ;;  %v41_v48 = vld [vmem:[%s2257_s2 + $0x10] sm:$0xff] }
   0xd   :  { %v931_v44 = vcombine.low %v68_v36, %v69_v37  ;;  %v55_v45 = vld [vmem:[%s2258_s3] sm:$0x1]  ;;  %275 = vperm.xlu1 %997, %v41_v48   ;;  %v42_v51 = vld [vmem:[%s2257_s2 + $0x18] sm:$0xff]  ;;  %v48_v52 = vld [vmem:[%s2257_s2 + $0x48] sm:$0xff] }
   0xe   :  { %v1243_v47 = vrot.slane %v55_v45, %v346_v42  ;;  %v932_v49 = vcombine.low %v70_v40, %v71_v41  ;;  %v39_v50 = vld [vmem:[%s2257_s2] sm:$0xff]  ;;  %v50_v54 = vld [vmem:[%s2257_s2 + $0x58] sm:$0xff]  ;;  %v44_v55 = vld [vmem:[%s2257_s2 + $0x28] sm:$0xff]  ;;  %vm246_vm3 = vcmp.gt.f32.partialorder %v55_v45, -0.5 }
   0xf   :  { %985 = vmatprep.mubr.msk.bf16.mxu1 %vm124_vm0, %v931_v44  ;;  %265 = vperm.xlu0 %996, %v39_v50   ;;  %v43_v53 = vld [vmem:[%s2257_s2 + $0x20] sm:$0xff]  ;;  %v52_v56 = vld [vmem:[%s2257_s2 + $0x68] sm:$0xff]  ;;  %v45_v57 = vld [vmem:[%s2257_s2 + $0x30] sm:$0xff]  ;;  %v418_v5 = vsel %vm246_vm3, 1, %v1144_v2 }
  0x10   :  { %v46_v58 = vld [vmem:[%s2257_s2 + $0x38] sm:$0xff]  ;;  %v47_v59 = vld [vmem:[%s2257_s2 + $0x40] sm:$0xff]  ;;  %v49_v60 = vld [vmem:[%s2257_s2 + $0x50] sm:$0xff]  ;;  %v1300_v6 = vrot.slane %v418_v5, %v346_v42 }
  0x11   :  { %280 = vperm.xlu1 %997, %v42_v51   ;;  %v51_v61 = vld [vmem:[%s2257_s2 + $0x60] sm:$0xff]  ;;  %v53_v38 = vld [vmem:[%s2257_s2 + $0x70] sm:$0xff]  ;;  %v54_v39 = vld [vmem:[%s2257_s2 + $0x78] sm:$0xff] }
  0x12   :  { %978 = vmatmul.mubr.msk.bf16.gmra.mrb[4].mxu0 %vm124_vm0, %v928_v46  ;;  %vm2294_vm4 = vcmp.eq.s32.totalorder %v1300_v6, 1 }
  0x13   :  { %986 = vmatmul.mubr.msk.bf16.gmra.mrb[4].mxu1 %vm124_vm0, %v932_v49  ;;  %310 = vperm.xlu0 %996, %v48_v52  }
  0x15   :  { %285 = vperm.xlu1 %997, %v43_v53  }
  0x17   :  { %320 = vperm.xlu0 %996, %v50_v54  }
  0x19   :  { %290 = vperm.xlu1 %997, %v44_v55  }
  0x1b   :  { %330 = vperm.xlu0 %996, %v52_v56  }
  0x1d   :  { %295 = vperm.xlu1 %997, %v45_v57  }
  0x21   :  { %300 = vperm.xlu1 %997, %v46_v58  }
  0x25   :  { %305 = vperm.xlu1 %997, %v47_v59  }
  0x29   :  { %315 = vperm.xlu1 %997, %v49_v60  }
  0x2d   :  { %325 = vperm.xlu1 %997, %v51_v61  }
  0x84   :  { %v1287_v62 = vpop.permute.xlu1 %270 }
  0x85   :  { %vm350_vm1 = vcmp.eq.f32.partialorder %v1287_v62, %v1243_v47  ;;  %v368_v62 = vadd.s32 16, %v1181_v4 }
  0x86   :  { %vm1576_vm14 = vmand %vm350_vm1, %vm2294_vm4 }
  0x8c   :  { %v1291_v63 = vpop.permute.xlu1 %275 }
  0x8d   :  { %vm351_vm5 = vcmp.eq.f32.partialorder %v1291_v63, %v1243_v47  ;;  %v2320_v63 = vmov 0 }
  0x8e   :  { %v1443_v43 = vpop.permute.xlu0 %265  ;;  %vm1588_vm15 = vmand %vm351_vm5, %vm2294_vm4 }
  0x8f   :  { %vm349_vm7 = vcmp.eq.f32.partialorder %v1443_v43, %v1243_v47 }
  0x90   :  { %v1293_v1 = vpop.permute.xlu1 %280  ;;  %vm1601_vm3 = vmand %vm349_vm7, %vm2294_vm4 }
  0x91   :  { %vm352_vm8 = vcmp.eq.f32.partialorder %v1293_v1, %v1243_v47  ;;  %v2321_v63 = vsel %vm1601_vm3, 4294967295, %v2320_v63  ;;  %v2326_v1 = vmov 0 }
  0x92   :  { %v1447_v45 = vpop.permute.xlu0 %310 }
  0x93   :  { %vm2262_vm12 = vcmp.eq.f32.partialorder %v1447_v45, %v1243_v47 }
  0x94   :  { %v1295_v3 = vpop.permute.xlu1 %285 }
  0x95   :  { %vm353_vm2 = vcmp.eq.f32.partialorder %v1295_v3, %v1243_v47 }
  0x96   :  { %v1451_v48 = vpop.permute.xlu0 %320 }
  0x97   :  { %vm2260_vm10 = vcmp.eq.f32.partialorder %v1451_v48, %v1243_v47 }
  0x98   :  { %v1437_v40 = vpop.permute.xlu1 %290 }
  0x9a   :  { %v1455_v50 = vpop.permute.xlu0 %330 }
  0x9c   :  { %v1439_v41 = vpop.permute.xlu1 %295 }
  0x9d   :  { %vm2264_vm11 = vcmp.eq.f32.partialorder %v1439_v41, %v1243_v47 }
  0xa0   :  { %v1441_v42 = vpop.permute.xlu1 %300 }
  0xa1   :  { %vm2265_vm13 = vcmp.eq.f32.partialorder %v1441_v42, %v1243_v47 }
  0xa4   :  { %v1445_v44 = vpop.permute.xlu1 %305 }
  0xa5   :  { %vm2263_vm9 = vcmp.eq.f32.partialorder %v1445_v44, %v1243_v47 }
  0xa8   :  { %v1449_v46 = vpop.permute.xlu1 %315 }
  0xa9   :  { %vm2261_vm6 = vcmp.eq.f32.partialorder %v1449_v46, %v1243_v47 }
  0xac   :  { %v1453_v49 = vpop.permute.xlu1 %325 }
  0xdd   :  { %v1303_v7 = vpop.f32.mrb[0].mxu0 }
  0xde   :  { %v1305_v8 = vpop.f32.mrb[0].mxu1  ;;  %v1307_v9 = vpop.f32.mrb[1].mxu0  ;;  %v1312_v10 = vsel %vm2294_vm4, %v1303_v7, -1e+30 }
  0xdf   :  { %v1314_v11 = vpop.f32.mrb[1].mxu1  ;;  %v1319_v2 = vsel %vm2294_vm4, %v1305_v8, -1e+30  ;;  %444 = vmax.xlane.f32.xlu1 %v1312_v10  ;;  %v1322_v12 = vpop.f32.mrb[2].mxu0  ;;  %v1339_v17 = vsel %vm2294_vm4, %v1307_v9, -1e+30 }
  0xe0   :  { %460 = vmax.xlane.f32.xlu0 %v1319_v2  ;;  %v1325_v13 = vpop.f32.mrb[2].mxu1  ;;  %v1327_v14 = vpop.f32.mrb[3].mxu0  ;;  %v1332_v15 = vsel %vm2294_vm4, %v1322_v12, -1e+30  ;;  %v1357_v22 = vsel %vm2294_vm4, %v1314_v11, -1e+30 }
  0xe1   :  { %v1334_v16 = vpop.f32.mrb[3].mxu1  ;;  %v1348_v19 = vsel %vm2294_vm4, %v1325_v13, -1e+30  ;;  %v1380_v29 = vsel %vm2294_vm4, %v1327_v14, -1e+30 }
  0xe2   :  { %v1374_v28 = vsel %vm2294_vm4, %v1334_v16, -1e+30 }
  0xe3   :  { %446 = vmax.xlane.f32.xlu1 %v1332_v15 }
  0xe4   :  { %440 = vmax.xlane.f32.xlu0 %v1339_v17 }
  0xe5   :  { %v1343_v18 = vpop.f32.mrb[4].mxu0 }
  0xe6   :  { %v1350_v20 = vpop.f32.mrb[5].mxu0  ;;  %v1352_v21 = vpop.f32.mrb[4].mxu1  ;;  %v1391_v31 = vsel %vm2294_vm4, %v1343_v18, -1e+30 }
  0xe7   :  { %462 = vmax.xlane.f32.xlu1 %v1348_v19  ;;  %v1360_v23 = vpop.f32.mrb[6].mxu0  ;;  %v1362_v24 = vpop.f32.mrb[5].mxu1  ;;  %v1403_v33 = vsel %vm2294_vm4, %v1352_v21, -1e+30  ;;  %v1415_v35 = vsel %vm2294_vm4, %v1350_v20, -1e+30 }
  0xe8   :  { %456 = vmax.xlane.f32.xlu0 %v1357_v22  ;;  %v1365_v25 = vpop.f32.mrb[7].mxu0  ;;  %v1367_v26 = vpop.f32.mrb[6].mxu1  ;;  %v1386_v30 = vsel %vm2294_vm4, %v1360_v23, -1e+30  ;;  %v1427_v37 = vsel %vm2294_vm4, %v1362_v24, -1e+30 }
  0xe9   :  { %v1369_v27 = vpop.f32.mrb[7].mxu1  ;;  %v1398_v32 = vsel %vm2294_vm4, %v1367_v26, -1e+30  ;;  %v1410_v34 = vsel %vm2294_vm4, %v1365_v25, -1e+30 }
  0xea   :  { %v1422_v36 = vsel %vm2294_vm4, %v1369_v27, -1e+30 }
  0xeb   :  { %458 = vmax.xlane.f32.xlu1 %v1374_v28 }
  0xec   :  { %442 = vmax.xlane.f32.xlu0 %v1380_v29 }
  0xef   :  { %454 = vmax.xlane.f32.xlu1 %v1386_v30 }
  0xf0   :  { %452 = vmax.xlane.f32.xlu0 %v1391_v31 }
  0xf3   :  { %470 = vmax.xlane.f32.xlu1 %v1398_v32 }
  0xf4   :  { %468 = vmax.xlane.f32.xlu0 %v1403_v33 }
  0xf7   :  { %450 = vmax.xlane.f32.xlu1 %v1410_v34 }
  0xf8   :  { %448 = vmax.xlane.f32.xlu0 %v1415_v35 }
  0xfb   :  { %466 = vmax.xlane.f32.xlu1 %v1422_v36 }
  0xfc   :  { %464 = vmax.xlane.f32.xlu0 %v1427_v37 }
 0x10c   :  { %335 = vperm.xlu1 %997, %v53_v38  }
 0x112   :  { %340 = vperm.xlu0 %996, %v54_v39  }
 0x16c   :  { %v445_v51 = vpop.xlane.xlu1 %444 }
 0x16d   :  { %v461_v52 = vpop.xlane.xlu0 %460  ;;  %v474_v53 = vsub.f32 %v1312_v10, %v445_v51  ;;  %v1459_v54 = vsub.f32 %v1303_v7, %v445_v51 }
 0x16e   :  { %v482_v55 = vsub.f32 %v1319_v2, %v461_v52  ;;  %v1463_v56 = vsub.f32 %v1305_v8, %v461_v52 }
 0x16f   :  { %v492_v57 = vmul.f32 1.442695, %v474_v53 }
 0x170   :  { %v508_v58 = vmul.f32 1.442695, %v482_v55  ;;  %v447_v59 = vpop.xlane.xlu1 %446 }
 0x171   :  { %1000 = vpow2.f32 %v492_v57  ;;  %v441_v60 = vpop.xlane.xlu0 %440  ;;  %v475_v61 = vsub.f32 %v1332_v15, %v447_v59  ;;  %v1467_v5 = vsub.f32 %v1322_v12, %v447_v59 }
 0x172   :  { %v472_v10 = vsub.f32 %v1339_v17, %v441_v60  ;;  %v1471_v7 = vsub.f32 %v1307_v9, %v441_v60  ;;  %1002 = vpow2.f32 %v508_v58 }
 0x173   :  { %v494_v38 = vmul.f32 1.442695, %v475_v61 }
 0x174   :  { %v488_v2 = vmul.f32 1.442695, %v472_v10  ;;  %v463_v8 = vpop.xlane.xlu1 %462 }
 0x175   :  { %v457_v39 = vpop.xlane.xlu0 %456  ;;  %v483_v51 = vsub.f32 %v1348_v19, %v463_v8  ;;  %v1475_v52 = vsub.f32 %v1325_v13, %v463_v8 }
 0x176   :  { %1004 = vpow2.f32 %v488_v2  ;;  %v480_v15 = vsub.f32 %v1357_v22, %v457_v39  ;;  %v1479_v12 = vsub.f32 %v1314_v11, %v457_v39 }
 0x177   :  { %1006 = vpow2.f32 %v494_v38  ;;  %v510_v9 = vmul.f32 1.442695, %v483_v51 }
 0x178   :  { %v504_v17 = vmul.f32 1.442695, %v480_v15  ;;  %v459_v53 = vpop.xlane.xlu1 %458 }
 0x179   :  { %v481_v55 = vsub.f32 %v1374_v28, %v459_v53  ;;  %v1483_v57 = vsub.f32 %v1334_v16, %v459_v53  ;;  %v443_v58 = vpop.xlane.xlu0 %442 }
 0x17a   :  { %1008 = vpow2.f32 %v504_v17  ;;  %v473_v13 = vsub.f32 %v1380_v29, %v443_v58  ;;  %v1487_v19 = vsub.f32 %v1327_v14, %v443_v58 }
 0x17b   :  { %v1001_v22 = vpop.eup %1000  ;;  %1010 = vpow2.f32 %v510_v9  ;;  %v506_v11 = vmul.f32 1.442695, %v481_v55 }
 0x17c   :  { %v490_v59 = vmul.f32 1.442695, %v473_v13  ;;  %v455_v60 = vpop.xlane.xlu1 %454  ;;  %v522_v16 = vsel %vm351_vm5, 0.0, %v1001_v22  ;;  %v1003_v28 = vpop.eup %1002  ;;  %vm1610_vm5 = vmand %vm352_vm8, %vm2294_vm4 }
 0x17d   :  { %v453_v61 = vpop.xlane.xlu0 %452  ;;  %v479_v10 = vsub.f32 %v1386_v30, %v455_v60  ;;  %v1496_v29 = vsub.f32 %v1360_v23, %v455_v60  ;;  %540 = vadd.xlane.f32.xlu0 %v522_v16  ;;  %v530_v23 = vsel %vm2261_vm6, 0.0, %v1003_v28 }
 0x17e   :  { %v478_v14 = vsub.f32 %v1391_v31, %v453_v61  ;;  %v1500_v2 = vsub.f32 %v1343_v18, %v453_v61  ;;  %1012 = vpow2.f32 %v490_v59 }
 0x17f   :  { %1014 = vpow2.f32 %v506_v11  ;;  %v502_v30 = vmul.f32 1.442695, %v479_v10 }
 0x180   :  { %v1005_v38 = vpop.eup %1004  ;;  %v500_v8 = vmul.f32 1.442695, %v478_v14  ;;  %v471_v39 = vpop.xlane.xlu1 %470 }
 0x181   :  { %v469_v31 = vpop.xlane.xlu0 %468  ;;  %v1510_v18 = vsub.f32 %v1367_v26, %v471_v39  ;;  %556 = vadd.xlane.f32.xlu0 %v530_v23  ;;  %v520_v51 = vsel %vm349_vm7, 0.0, %v1005_v38  ;;  %v1007_v15 = vpop.eup %1006  ;;  %v487_v60 = vsub.f32 %v1398_v32, %v471_v39  ;;  %vm2268_vm7 = vmmov 1  }
 0x182   :  { %1016 = vpow2.f32 %v500_v8  ;;  %v1516_v17 = vsub.f32 %v1352_v21, %v469_v31  ;;  %536 = vadd.xlane.f32.xlu1 %v520_v51  ;;  %v523_v13 = vsel %vm352_vm8, 0.0, %v1007_v15  ;;  %v367_v51 = vadd.s32 8, %v1181_v4 }
 0x183   :  { %1018 = vpow2.f32 %v502_v30  ;;  %v1566_v15 = vand.u32 127, %v344_v0 }
 0x184   :  { %v1009_v9 = vpop.eup %1008  ;;  %v451_v26 = vpop.xlane.xlu1 %450 }
 0x185   :  { %v449_v53 = vpop.xlane.xlu0 %448  ;;  %v477_v55 = vsub.f32 %v1410_v34, %v451_v26  ;;  %v1524_v58 = vsub.f32 %v1365_v25, %v451_v26  ;;  %v528_v21 = vsel %vm2263_vm9, 0.0, %v1009_v9  ;;  %v1011_v22 = vpop.eup %1010  ;;  %v486_v25 = vsub.f32 %v1403_v33, %v469_v31 }
 0x186   :  { %v476_v11 = vsub.f32 %v1415_v35, %v449_v53  ;;  %v1534_v59 = vsub.f32 %v1350_v20, %v449_v53  ;;  %552 = vadd.xlane.f32.xlu0 %v528_v21  ;;  %542 = vadd.xlane.f32.xlu1 %v523_v13  ;;  %v531_v14 = vsel %vm2260_vm10, 0.0, %v1011_v22  ;;  %v518_v31 = vmul.f32 1.442695, %v487_v60 }
 0x187   :  { %v498_v34 = vmul.f32 1.442695, %v477_v55  ;;  %v516_v30 = vmul.f32 1.442695, %v486_v25  ;;  %v369_v9 = vadd.s32 24, %v1181_v4  ;;  %v2316_v26 = vmov 0 }
 0x188   :  { %v496_v16 = vmul.f32 1.442695, %v476_v11  ;;  %v467_v28 = vpop.xlane.xlu1 %466  ;;  %v1013_v61 = vpop.eup %1012  ;;  %v2317_v26 = vsel %vm1576_vm14, 4294967295, %v2316_v26  ;;  %v2318_v53 = vmov 0  ;;  %vm403_vm0 = vcmp.eq.s32.totalorder %v367_v51, %v1566_v15 }
 0x189   :  { %1020 = vpow2.f32 %v498_v34  ;;  %v465_v10 = vpop.xlane.xlu0 %464  ;;  %v485_v35 = vsub.f32 %v1422_v36, %v467_v28  ;;  %v1542_v20 = vsub.f32 %v1369_v27, %v467_v28  ;;  %v1015_v38 = vpop.eup %1014  ;;  %v521_v8 = vsel %vm350_vm1, 0.0, %v1013_v61  ;;  %vm1619_vm6 = vmxor %vm403_vm0, %vm2268_vm7 }
 0x18a   :  { %1022 = vpow2.f32 %v496_v16  ;;  %v484_v33 = vsub.f32 %v1427_v37, %v465_v10  ;;  %v1549_v32 = vsub.f32 %v1362_v24, %v465_v10  ;;  %558 = vadd.xlane.f32.xlu1 %v531_v14  ;;  %538 = vadd.xlane.f32.xlu0 %v521_v8  ;;  %v529_v37 = vsel %vm2262_vm12, 0.0, %v1015_v38  ;;  %vm1636_vm0 = vmand %vm353_vm2, %vm2294_vm4 }
 0x18b   :  { %v514_v36 = vmul.f32 1.442695, %v485_v35  ;;  %v2319_v53 = vsel %vm1588_vm15, 4294967295, %v2318_v53  ;;  %vm354_vm1 = vcmp.eq.f32.partialorder %v1437_v40, %v1243_v47  ;;  %v2322_v13 = vmov 0 }
 0x18c   :  { %v1017_v27 = vpop.eup %1016  ;;  %v512_v39 = vmul.f32 1.442695, %v484_v33  ;;  %v2323_v13 = vsel %vm1610_vm5, 4294967295, %v2322_v13  ;;  %vm405_vm10 = vcmp.eq.s32.totalorder %v369_v9, %v1566_v15  ;;  %v2324_v22 = vmov 0  ;;  %vm1625_vm12 = vmand %vm354_vm1, %vm2294_vm4  ;;  %v1661_v10 = vpop.permute.xlu1 %335 }
 0x18d   :  { %1024 = vpow2.f32 %v514_v36  ;;  %v526_v24 = vsel %vm2264_vm11, 0.0, %v1017_v27  ;;  %v1019_v23 = vpop.eup %1018  ;;  %v2325_v22 = vsel %vm1619_vm6, 4294967295, %v2324_v22  ;;  %v2327_v1 = vsel %vm1625_vm12, 4294967295, %v2326_v1  ;;  %vm1645_vm9 = vmxor %vm405_vm10, %vm2268_vm7 }
 0x18e   :  { %1026 = vpow2.f32 %v512_v39  ;;  %554 = vadd.xlane.f32.xlu1 %v529_v37  ;;  %548 = vadd.xlane.f32.xlu0 %v526_v24  ;;  %v527_v0 = vsel %vm2265_vm13, 0.0, %v1019_v23  ;;  %vm404_vm8 = vcmp.eq.s32.totalorder %v368_v62, %v1566_v15  ;;  %v371_v11 = vadd.s32 40, %v1181_v4 }
 0x18f   :  { %1028 = vpow2.f32 %v516_v30  ;;  %v2328_v25 = vmov 0  ;;  %v2330_v16 = vmov 0  ;;  %vm2267_vm11 = vcmp.eq.f32.partialorder %v1453_v49, %v1243_v47  ;;  %vm1669_vm10 = vmxor %vm404_vm8, %vm2268_vm7 }
 0x190   :  { %1030 = vpow2.f32 %v518_v31  ;;  %v2329_v25 = vsel %vm1636_vm0, 4294967295, %v2328_v25  ;;  %v2331_v16 = vsel %vm1645_vm9, 4294967295, %v2330_v16  ;;  %vm402_vm13 = vcmp.eq.s32.totalorder %v1181_v4, %v1566_v15 }
 0x191   :  { %v1642_v60 = vpop.permute.xlu0 %340  ;;  %v370_v61 = vadd.s32 32, %v1181_v4  ;;  %v2332_v14 = vmov 0  ;;  %vm2334_vm8 = vcmp.eq.f32.partialorder %v1441_v42, %v1243_v47  ;;  %v2335_v33 = vmov 0 }
 0x192   :  { %550 = vadd.xlane.f32.xlu1 %v527_v0  ;;  %v2333_v14 = vsel %vm1669_vm10, 4294967295, %v2332_v14  ;;  %vm1685_vm7 = vmand %vm2334_vm8, %vm2294_vm4  ;;  %vm2337_vm0 = vmmov 1   ;;  %v2338_v8 = vmov 0  ;;  %v2341_v27 = vmov 0 }
 0x193   :  { %v1021_v55 = vpop.eup %1020  ;;  %v2336_v33 = vsel %vm1685_vm7, 4294967295, %v2335_v33  ;;  %vm2276_vm8 = vcmp.eq.f32.partialorder %v1661_v10, %v1243_v47  ;;  %vm406_vm7 = vcmp.eq.s32.totalorder %v370_v61, %v1566_v15  ;;  %v373_v42 = vadd.s32 56, %v1181_v4 }
 0x194   :  { %v1023_v21 = vpop.eup %1022  ;;  %v525_v40 = vsel %vm354_vm1, 0.0, %v1021_v55  ;;  %vm2266_vm1 = vcmp.eq.f32.partialorder %v1455_v50, %v1243_v47  ;;  %vm2343_vm5 = vcmp.eq.f32.partialorder %v1642_v60, %v1243_v47  ;;  %v2344_v39 = vmov 0 }
 0x195   :  { %v524_v43 = vsel %vm353_vm2, 0.0, %v1023_v21  ;;  %vm2340_vm2 = vcmp.eq.f32.partialorder %v1439_v41, %v1243_v47  ;;  %v372_v24 = vadd.s32 48, %v1181_v4  ;;  %v2346_v37 = vmov 0 }
 0x196   :  { %544 = vadd.xlane.f32.xlu0 %v524_v43  ;;  %546 = vadd.xlane.f32.xlu1 %v525_v40  ;;  %vm1699_vm9 = vmand %vm2340_vm2, %vm2294_vm4  ;;  %v2349_v23 = vmov 0  ;;  %v1146_v31 = vmov 0.0   ;;  %v2353_v0 = vmov 0  ;;  %v376_v62 = vadd.s32 80, %v1181_v4 }
 0x197   :  { %v1025_v34 = vpop.eup %1024  ;;  %v2342_v27 = vsel %vm1699_vm9, 4294967295, %v2341_v27  ;;  %vm2348_vm9 = vcmp.eq.f32.partialorder %v1445_v44, %v1243_v47  ;;  %v374_v44 = vadd.s32 64, %v1181_v4  ;;  %v2356_v55 = vmov 0 }
 0x198   :  { %v1027_v28 = vpop.eup %1026  ;;  %v533_v3 = vsel %vm2266_vm1, 0.0, %v1025_v34  ;;  %vm1690_vm1 = vmxor %vm402_vm13, %vm2337_vm0  ;;  %v2358_v21 = vmov 0  ;;  %v2361_v40 = vmov 0  ;;  %v377_v34 = vadd.s32 88, %v1181_v4 }
 0x199   :  { %v532_v35 = vsel %vm2267_vm11, 0.0, %v1027_v28  ;;  %v1029_v38 = vpop.eup %1028  ;;  %vm407_vm11 = vcmp.eq.s32.totalorder %v371_v11, %v1566_v15  ;;  %v2339_v8 = vsel %vm1690_vm1, 4294967295, %v2338_v8  ;;  %vm2281_vm13 = vmand %vm1601_vm3, %vm1690_vm1  ;;  %vm2364_vm1 = vnez %v2331_v16 }
 0x19a   :  { %560 = vadd.xlane.f32.xlu0 %v532_v35  ;;  %562 = vadd.xlane.f32.xlu1 %v533_v3  ;;  %v1031_v36 = vpop.eup %1030  ;;  %v534_v30 = vsel %vm2276_vm8, 0.0, %v1029_v38  ;;  %vm1718_vm2 = vmxor %vm407_vm11, %vm2337_vm0  ;;  %vm409_vm8 = vcmp.eq.s32.totalorder %v373_v42, %v1566_v15  ;;  %v943_v9 = vsel %vm2281_vm13, 1.0, %v1146_v31  ;;  %vm2352_vm11 = vcmp.eq.f32.partialorder %v1447_v45, %v1243_v47 }
 0x19b   :  { %v535_v41 = vsel %vm2343_vm5, 0.0, %v1031_v36  ;;  %v2345_v39 = vsel %vm1718_vm2, 4294967295, %v2344_v39  ;;  %vm1728_vm5 = vmxor %vm406_vm7, %vm2337_vm0  ;;  %v375_v45 = vadd.s32 72, %v1181_v4  ;;  %v2380_v28 = vmov 0 }
 0x19c   :  { %v2347_v37 = vsel %vm1728_vm5, 4294967295, %v2346_v37  ;;  %vm1742_vm10 = vmand %vm2348_vm9, %vm2294_vm4  ;;  %vm408_vm9 = vcmp.eq.s32.totalorder %v372_v24, %v1566_v15  ;;  %vm410_vm5 = vcmp.eq.s32.totalorder %v374_v44, %v1566_v15  ;;  %v379_v3 = vadd.s32 104, %v1181_v4  ;;  %v1134_v44 = vld [vmem:[%s2257_s2 + $0x8] sm:$0xff] }
 0x19d   :  { %v2350_v23 = vsel %vm1742_vm10, 4294967295, %v2349_v23  ;;  %vm2351_vm7 = vmand %vm1576_vm14, %vm1619_vm6  ;;  %vm2360_vm14 = vcmp.eq.f32.partialorder %v1449_v46, %v1243_v47  ;;  %v2369_v46 = vmov 0  ;;  %v2385_v35 = vmov 0 }
 0x19e   :  { %566 = vadd.xlane.f32.xlu1 %v535_v41  ;;  %564 = vadd.xlane.f32.xlu0 %v534_v30  ;;  %v944_v51 = vsel %vm2351_vm7, 1.0, %v1146_v31  ;;  %vm1765_vm10 = vmand %vm2352_vm11, %vm2294_vm4  ;;  %vm2355_vm7 = vnez %v2329_v25  ;;  %v378_v38 = vadd.s32 96, %v1181_v4  ;;  %v2387_v36 = vmov 0 }
 0x19f   :  { %v2354_v0 = vsel %vm1765_vm10, 4294967295, %v2353_v0  ;;  %vm1775_vm6 = vmxor %vm409_vm8, %vm2337_vm0  ;;  %vm2363_vm8 = vnez %v2323_v13  ;;  %v380_v30 = vadd.s32 112, %v1181_v4 }
 0x1a0   :  { %v2357_v55 = vsel %vm1775_vm6, 4294967295, %v2356_v55  ;;  %vm1781_vm11 = vmxor %vm408_vm9, %vm2337_vm0  ;;  %vm2366_vm9 = vnez %v2333_v14 }
 0x1a1   :  { %v2359_v21 = vsel %vm1781_vm11, 4294967295, %v2358_v21  ;;  %vm1790_vm13 = vmand %vm2360_vm14, %vm2294_vm4  ;;  %vm2368_vm14 = vcmp.eq.f32.partialorder %v1451_v48, %v1243_v47  ;;  %v2373_v48 = vmov 0 }
 0x1a2   :  { %810 = vadd.xlane.f32.xlu1 %v944_v51  ;;  %808 = vadd.xlane.f32.xlu0 %v943_v9  ;;  %v2362_v40 = vsel %vm1790_vm13, 4294967295, %v2361_v40  ;;  %vm2365_vm3 = vmand %vm2363_vm8, %vm2364_vm1  ;;  %vm2372_vm8 = vcmp.eq.f32.partialorder %v1455_v50, %v1243_v47  ;;  %vm2377_vm1 = vcmp.eq.f32.partialorder %v1453_v49, %v1243_v47  ;;  %v2378_v50 = vmov 0 }
 0x1a3   :  { %v946_v43 = vsel %vm2365_vm3, 1.0, %v1146_v31  ;;  %vm2367_vm10 = vmand %vm1588_vm15, %vm2366_vm9  ;;  %vm2371_vm3 = vnez %v2336_v33  ;;  %v381_v51 = vadd.s32 120, %v1181_v4  ;;  %v2397_v9 = vmov 0 }
 0x1a4   :  { %v945_v11 = vsel %vm2367_vm10, 1.0, %v1146_v31  ;;  %vm1812_vm13 = vmand %vm2368_vm14, %vm2294_vm4  ;;  %vm412_vm10 = vcmp.eq.s32.totalorder %v376_v62, %v1566_v15  ;;  %vm2376_vm14 = vnez %v2342_v27 }
 0x1a5   :  { %v2370_v46 = vsel %vm1812_vm13, 4294967295, %v2369_v46  ;;  %vm1826_vm9 = vmand %vm2372_vm8, %vm2294_vm4  ;;  %vm411_vm13 = vcmp.eq.s32.totalorder %v375_v45, %v1566_v15  ;;  %v2406_v45 = vmov 0 }
 0x1a6   :  { %814 = vadd.xlane.f32.xlu1 %v946_v43  ;;  %812 = vadd.xlane.f32.xlu0 %v945_v11  ;;  %v2374_v48 = vsel %vm1826_vm9, 4294967295, %v2373_v48  ;;  %vm1841_vm6 = vmand %vm2377_vm1, %vm2294_vm4  ;;  %vm2383_vm1 = vnez %v2347_v37  ;;  %v2411_v11 = vmov 0 }
 0x1a7   :  { %2375 = vst [vmem:[#allocation2_spill] sm:$0xff] %v2374_v48  ;;  %v2379_v50 = vsel %vm1841_vm6, 4294967295, %v2378_v50  ;;  %vm1846_vm8 = vmxor %vm410_vm5, %vm2337_vm0 }
 0x1a8   :  { %v2381_v28 = vsel %vm1846_vm8, 4294967295, %v2380_v28  ;;  %vm2382_vm15 = vmand %vm1625_vm12, %vm1718_vm2  ;;  %vm2394_vm12 = vnez %v2354_v0 }
 0x1a9   :  { %v948_v61 = vsel %vm2382_vm15, 1.0, %v1146_v31  ;;  %vm2384_vm4 = vmand %vm2355_vm7, %vm2383_vm1  ;;  %vm2389_vm15 = vnez %v2350_v23  ;;  %vm415_vm1 = vcmp.eq.s32.totalorder %v379_v3, %v1566_v15  ;;  %v2420_v3 = vmov 0 }
 0x1aa   :  { %v947_v49 = vsel %vm2384_vm4, 1.0, %v1146_v31  ;;  %vm1864_vm5 = vmxor %vm412_vm10, %vm2337_vm0  ;;  %818 = vadd.xlane.f32.xlu1 %v948_v61  ;;  %vm413_vm4 = vcmp.eq.s32.totalorder %v377_v34, %v1566_v15  ;;  %vm414_vm10 = vcmp.eq.s32.totalorder %v378_v38, %v1566_v15  ;;  %v588_v61 = vmul.f32 1.442695, %v1459_v54 }
 0x1ab   :  { %v2386_v35 = vsel %vm1864_vm5, 4294967295, %v2385_v35  ;;  %816 = vadd.xlane.f32.xlu0 %v947_v49  ;;  %vm1870_vm6 = vmxor %vm411_vm13, %vm2337_vm0  ;;  %vm2391_vm13 = vnez %v2357_v55  ;;  %v604_v49 = vmul.f32 1.442695, %v1463_v56  ;;  %v584_v38 = vmul.f32 1.442695, %v1471_v7 }
 0x1ac   :  { %v2388_v36 = vsel %vm1870_vm6, 4294967295, %v2387_v36  ;;  %vm2392_vm7 = vmand %vm2371_vm3, %vm2391_vm13  ;;  %vm416_vm3 = vcmp.eq.s32.totalorder %v380_v30, %v1566_v15  ;;  %1032 = vpow2.f32 %v588_v61  ;;  %v606_v30 = vmul.f32 1.442695, %v1475_v52 }
 0x1ad   :  { %v950_v42 = vsel %vm2392_vm7, 1.0, %v1146_v31  ;;  %vm2393_vm2 = vmand %vm2376_vm14, %vm1781_vm11  ;;  %vm2409_vm14 = vnez %v2386_v35  ;;  %1034 = vpow2.f32 %v604_v49 }
 0x1ae   :  { %v949_v41 = vsel %vm2393_vm2, 1.0, %v1146_v31  ;;  %822 = vadd.xlane.f32.xlu1 %v950_v42  ;;  %vm1903_vm7 = vmxor %vm413_vm4, %vm2337_vm0  ;;  %v590_v42 = vmul.f32 1.442695, %v1467_v5  ;;  %1036 = vpow2.f32 %v584_v38  ;;  %v598_v38 = vmul.f32 1.442695, %v1496_v29 }
 0x1af   :  { %820 = vadd.xlane.f32.xlu0 %v949_v41  ;;  %vm1909_vm2 = vmxor %vm415_vm1, %vm2337_vm0  ;;  %v600_v41 = vmul.f32 1.442695, %v1479_v12 }
 0x1b0   :  { %v2398_v9 = vsel %vm1909_vm2, 4294967295, %v2397_v9  ;;  %vm1914_vm5 = vmxor %vm414_vm10, %vm2337_vm0  ;;  %vm2404_vm10 = vnez %v2370_v46  ;;  %1038 = vpow2.f32 %v590_v42 }
 0x1b1   :  { %2399 = vst [vmem:[#allocation3_spill] sm:$0xff] %v2398_v9  ;;  %vm2402_vm4 = vmand %vm2394_vm12, %vm1870_vm6  ;;  %vm417_vm6 = vcmp.eq.s32.totalorder %v381_v51, %v1566_v15  ;;  %1040 = vpow2.f32 %v600_v41  ;;  %v586_v51 = vmul.f32 1.442695, %v1487_v19 }
 0x1b2   :  { %v952_v62 = vsel %vm2402_vm4, 1.0, %v1146_v31  ;;  %vm2403_vm1 = vmand %vm2389_vm15, %vm1846_vm8  ;;  %vm2408_vm4 = vnez %v2362_v40  ;;  %vm2415_vm15 = vcmp.eq.f32.partialorder %v1661_v10, %v1243_v47  ;;  %1042 = vpow2.f32 %v606_v30 }
 0x1b3   :  { %v951_v4 = vsel %vm2403_vm1, 1.0, %v1146_v31  ;;  %vm2309_vm13 = vmand %vm2404_vm10, %vm1903_vm7  ;;  %826 = vadd.xlane.f32.xlu1 %v952_v62  ;;  %vm2405_vm1 = vnez %v2379_v50 }
 0x1b4   :  { %824 = vadd.xlane.f32.xlu0 %v951_v4  ;;  %vm1945_vm11 = vmxor %vm416_vm3, %vm2337_vm0  ;;  %v954_v43 = vsel %vm2309_vm13, 1.0, %v1146_v31  ;;  %vm2414_vm3 = vcmp.eq.s32.totalorder %v1300_v6, 1  ;;  %v602_v4 = vmul.f32 1.442695, %v1483_v57 }
 0x1b5   :  { %v2407_v45 = vsel %vm1945_vm11, 4294967295, %v2406_v45  ;;  %vm2410_vm8 = vmand %vm2408_vm4, %vm2409_vm14 }
 0x1b6   :  { %v953_v15 = vsel %vm2410_vm8, 1.0, %v1146_v31  ;;  %vm1962_vm12 = vmxor %vm417_vm6, %vm2337_vm0  ;;  %vm2419_vm8 = vcmp.eq.f32.partialorder %v1642_v60, %v1243_v47 }
 0x1b7   :  { %v2412_v11 = vsel %vm1962_vm12, 4294967295, %v2411_v11  ;;  %vm1971_vm11 = vmand %vm2415_vm15, %vm2414_vm3  ;;  %830 = vadd.xlane.f32.xlu1 %v954_v43 }
 0x1b8   :  { %2413 = vst [vmem:[#allocation4_spill] sm:$0xff] %v2412_v11  ;;  %828 = vadd.xlane.f32.xlu0 %v953_v15  ;;  %vm2418_vm13 = vmmov %vm2414_vm3  ;;  %vm2425_vm3 = vnez %v2407_v45  ;;  %v596_v15 = vmul.f32 1.442695, %v1500_v2 }
 0x1b9   :  { %vm1980_vm6 = vmand %vm2419_vm8, %vm2418_vm13 }
 0x1ba   :  { %v2421_v3 = vsel %vm1980_vm6, 4294967295, %v2420_v3  ;;  %vm2423_vm0 = vmand %vm1826_vm9, %vm1909_vm2 }
 0x1bb   :  { %2422 = vst [vmem:[#allocation5_spill] sm:$0xff] %v2421_v3  ;;  %v956_v10 = vsel %vm2423_vm0, 1.0, %v1146_v31  ;;  %vm2424_vm15 = vmand %vm2405_vm1, %vm1914_vm5  ;;  %vm2426_vm0 = vnez %v2319_v53 }
 0x1bc   :  { %v955_v6 = vsel %vm2424_vm15, 1.0, %v1146_v31  ;;  %vm2315_vm13 = vmand %vm1971_vm11, %vm2425_vm3  ;;  %834 = vadd.xlane.f32.xlu1 %v956_v10  ;;  %vm2427_vm15 = vnez %v2333_v14 }
 0x1bd   :  { %832 = vadd.xlane.f32.xlu0 %v955_v6  ;;  %vm2314_vm8 = vmand %vm1980_vm6, %vm1962_vm12  ;;  %v957_v60 = vsel %vm2315_vm13, 1.0, %v1146_v31 }
 0x1be   :  { %v958_v47 = vsel %vm2314_vm8, 1.0, %v1146_v31  ;;  %v1033_v31 = vpop.eup %1032  ;;  %vm2428_vm8 = vmand %vm2426_vm0, %vm2427_vm15  ;;  %vm2430_vm0 = vnez %v2321_v63  ;;  %vm2431_vm15 = vnez %v2339_v8 }
 0x1bf   :  { %v1035_v10 = vpop.eup %1034  ;;  %vm2432_vm13 = vmand %vm2430_vm0, %vm2431_vm15  ;;  %vm2437_vm0 = vnez %v2381_v28 }
 0x1c0   :  { %838 = vadd.xlane.f32.xlu1 %v958_v47  ;;  %v1037_v47 = vpop.eup %1036 }
 0x1c1   :  { %836 = vadd.xlane.f32.xlu0 %v957_v60  ;;  %v1039_v42 = vpop.eup %1038 }
 0x1c2   :  { %v1041_v41 = vpop.eup %1040 }
 0x20a   :  { %v541_v62 = vpop.xlane.xlu0 %540 }
 0x20b   :  { %v618_v43 = vadd.f32 %v1033_v31, %v541_v62  ;;  %v592_v62 = vmul.f32 1.442695, %v1534_v59 }
 0x20d   :  { %1044 = vlog2.f32 %v618_v43 }
 0x20e   :  { %1046 = vpow2.f32 %v586_v51  ;;  %v557_v6 = vpop.xlane.xlu0 %556  ;;  %v594_v51 = vmul.f32 1.442695, %v1524_v58 }
 0x20f   :  { %1048 = vpow2.f32 %v602_v4  ;;  %v626_v60 = vadd.f32 %v1035_v10, %v557_v6  ;;  %v537_v61 = vpop.xlane.xlu1 %536  ;;  %v1043_v4 = vpop.eup %1042 }
 0x210   :  { %1050 = vpow2.f32 %v596_v15  ;;  %v616_v49 = vadd.f32 %v1037_v47, %v537_v61  ;;  %v608_v47 = vmul.f32 1.442695, %v1549_v32 }
 0x211   :  { %1052 = vlog2.f32 %v626_v60 }
 0x212   :  { %1054 = vlog2.f32 %v616_v49 }
 0x213   :  { %v553_v31 = vpop.xlane.xlu0 %552  ;;  %v543_v30 = vpop.xlane.xlu1 %542  ;;  %1056 = vpow2.f32 %v598_v38 }
 0x214   :  { %v624_v43 = vadd.f32 %v1041_v41, %v553_v31  ;;  %v619_v11 = vadd.f32 %v1039_v42, %v543_v30  ;;  %v610_v41 = vmul.f32 1.442695, %v1542_v20 }
 0x216   :  { %1058 = vlog2.f32 %v624_v43 }
 0x217   :  { %v1045_v10 = vpop.eup %1044  ;;  %1060 = vlog2.f32 %v619_v11  ;;  %v559_v15 = vpop.xlane.xlu1 %558  ;;  %v612_v11 = vmul.f32 1.442695, %v1516_v17 }
 0x218   :  { %v1047_v6 = vpop.eup %1046  ;;  %1062 = vpow2.f32 %v592_v62  ;;  %v637_v60 = vmul.f32 0.6931472, %v1045_v10  ;;  %v539_v61 = vpop.xlane.xlu0 %538  ;;  %v627_v49 = vadd.f32 %v1043_v4, %v559_v15  ;;  %v614_v4 = vmul.f32 1.442695, %v1510_v18 }
 0x219   :  { %v1049_v3 = vpop.eup %1048  ;;  %1064 = vpow2.f32 %v594_v51  ;;  %v617_v42 = vadd.f32 %v1047_v6, %v539_v61 }
 0x21a   :  { %v1051_v38 = vpop.eup %1050  ;;  %1066 = vlog2.f32 %v627_v49  ;;  %v666_v31 = vsub.f32 %v1459_v54, %v637_v60 }
 0x21b   :  { %v1053_v30 = vpop.eup %1052  ;;  %1068 = vlog2.f32 %v617_v42  ;;  %v555_v43 = vpop.xlane.xlu1 %554 }
 0x21c   :  { %v1055_v62 = vpop.eup %1054  ;;  %1070 = vpow2.f32 %v608_v47  ;;  %v653_v9 = vmul.f32 0.6931472, %v1053_v30  ;;  %v549_v10 = vpop.xlane.xlu0 %548  ;;  %v625_v48 = vadd.f32 %v1049_v3, %v555_v43  ;;  %v730_v51 = vsel %vm2428_vm8, %v666_v31, 0.0  ;;  %vm2429_vm8 = vmand %vm2408_vm4, %vm2409_vm14 }
 0x21d   :  { %1072 = vpow2.f32 %v610_v41  ;;  %v633_v54 = vmul.f32 0.6931472, %v1055_v62  ;;  %v622_v15 = vadd.f32 %v1051_v38, %v549_v10  ;;  %748 = vadd.xlane.f32.xlu0 %v730_v51  ;;  %v1057_v60 = vpop.eup %1056  ;;  %vm2433_vm14 = vnez %v2323_v13 }
 0x21e   :  { %1074 = vlog2.f32 %v625_v48  ;;  %v674_v6 = vsub.f32 %v1463_v56, %v653_v9  ;;  %vm2434_vm4 = vnez %v2331_v16 }
 0x21f   :  { %1076 = vlog2.f32 %v622_v15  ;;  %v551_v47 = vpop.xlane.xlu1 %550  ;;  %v664_v3 = vsub.f32 %v1471_v7, %v633_v54 }
 0x220   :  { %v1059_v61 = vpop.eup %1058  ;;  %1078 = vpow2.f32 %v612_v11  ;;  %v623_v53 = vadd.f32 %v1057_v60, %v551_v47  ;;  %v738_v14 = vsel %vm2429_vm8, %v674_v6, 0.0  ;;  %vm2435_vm8 = vmand %vm2433_vm14, %vm2434_vm4  ;;  %vm2440_vm4 = vnez %v2317_v26 }
 0x221   :  { %v1061_v49 = vpop.eup %1060  ;;  %1080 = vpow2.f32 %v614_v4  ;;  %v649_v41 = vmul.f32 0.6931472, %v1059_v61  ;;  %764 = vadd.xlane.f32.xlu0 %v738_v14  ;;  %v728_v7 = vsel %vm2432_vm13, %v664_v3, 0.0  ;;  %vm2436_vm13 = vnez %v2350_v23  ;;  %vm2439_vm14 = vmand %vm2404_vm10, %vm1903_vm7 }
 0x222   :  { %v1063_v48 = vpop.eup %1062  ;;  %v639_v56 = vmul.f32 0.6931472, %v1061_v49  ;;  %1082 = vlog2.f32 %v623_v53  ;;  %vm2438_vm15 = vmand %vm2436_vm13, %vm2437_vm0  ;;  %vm2441_vm7 = vnez %v2325_v22  ;;  %vm2444_vm13 = vnez %v2359_v21 }
 0x223   :  { %v1065_v9 = vpop.eup %1064  ;;  %v545_v42 = vpop.xlane.xlu0 %544  ;;  %v672_v11 = vsub.f32 %v1479_v12, %v649_v41  ;;  %vm2442_vm10 = vmand %vm2440_vm4, %vm2441_vm7  ;;  %vm2449_vm7 = vnez %v2329_v25 }
 0x224   :  { %v547_v38 = vpop.xlane.xlu1 %546  ;;  %v1067_v40 = vpop.eup %1066  ;;  %v620_v35 = vadd.f32 %v1063_v48, %v545_v42  ;;  %v667_v30 = vsub.f32 %v1467_v5, %v639_v56 }
 0x225   :  { %v621_v31 = vadd.f32 %v1065_v9, %v547_v38  ;;  %v1069_v43 = vpop.eup %1068  ;;  %v655_v62 = vmul.f32 0.6931472, %v1067_v40  ;;  %744 = vadd.xlane.f32.xlu0 %v728_v7  ;;  %v736_v13 = vsel %vm2438_vm15, %v672_v11, 0.0  ;;  %vm2446_vm15 = vnez %v2354_v0 }
 0x226   :  { %v1071_v10 = vpop.eup %1070  ;;  %v635_v51 = vmul.f32 0.6931472, %v1069_v43  ;;  %1084 = vlog2.f32 %v620_v35  ;;  %v731_v63 = vsel %vm2435_vm8, %v667_v30, 0.0  ;;  %vm2443_vm8 = vnez %v2342_v27 }
 0x227   :  { %v1073_v8 = vpop.eup %1072  ;;  %1086 = vlog2.f32 %v621_v31  ;;  %750 = vadd.xlane.f32.xlu1 %v731_v63  ;;  %v561_v4 = vpop.xlane.xlu0 %560  ;;  %v675_v5 = vsub.f32 %v1475_v52, %v655_v62  ;;  %vm2445_vm0 = vmand %vm2443_vm8, %vm2444_vm13  ;;  %vm2452_vm13 = vnez %v2336_v33 }
 0x228   :  { %v563_v54 = vpop.xlane.xlu1 %562  ;;  %v1075_v12 = vpop.eup %1074  ;;  %v628_v15 = vadd.f32 %v1071_v10, %v561_v4  ;;  %v665_v47 = vsub.f32 %v1487_v19, %v635_v51 }
 0x229   :  { %v629_v6 = vadd.f32 %v1073_v8, %v563_v54  ;;  %v1077_v60 = vpop.eup %1076  ;;  %760 = vadd.xlane.f32.xlu0 %v736_v13  ;;  %v739_v16 = vsel %vm2439_vm14, %v675_v5, 0.0  ;;  %v651_v61 = vmul.f32 0.6931472, %v1075_v12  ;;  %vm2447_vm14 = vnez %v2388_v36 }
 0x22a   :  { %v1079_v52 = vpop.eup %1078  ;;  %v645_v3 = vmul.f32 0.6931472, %v1077_v60  ;;  %1088 = vlog2.f32 %v628_v15  ;;  %v729_v19 = vsel %vm2442_vm10, %v665_v47, 0.0  ;;  %vm2448_vm4 = vmand %vm2446_vm15, %vm2447_vm14  ;;  %vm2450_vm10 = vnez %v2347_v37  ;;  %v1128_v47 = vld [vmem:[%s2257_s2 + $0x10] sm:$0xff] }
 0x22b   :  { %v1081_v53 = vpop.eup %1080  ;;  %1090 = vlog2.f32 %v629_v6  ;;  %766 = vadd.xlane.f32.xlu1 %v739_v16  ;;  %v565_v23 = vpop.xlane.xlu0 %564  ;;  %v673_v56 = vsub.f32 %v1483_v57, %v651_v61  ;;  %vm2451_vm8 = vmand %vm2449_vm7, %vm2450_vm10  ;;  %vm2457_vm7 = vnez %v2345_v39 }
 0x22c   :  { %v567_v28 = vpop.xlane.xlu1 %566  ;;  %v1083_v14 = vpop.eup %1082  ;;  %v630_v49 = vadd.f32 %v1079_v52, %v565_v23  ;;  %v670_v46 = vsub.f32 %v1500_v2, %v645_v3  ;;  %vm2455_vm14 = vmand %vm2405_vm1, %vm1914_vm5 }
 0x22d   :  { %v631_v41 = vadd.f32 %v1081_v53, %v567_v28  ;;  %v647_v24 = vmul.f32 0.6931472, %v1083_v14  ;;  %v737_v22 = vsel %vm2448_vm4, %v673_v56, 0.0  ;;  %vm2456_vm4 = vnez %v2327_v1  ;;  %vm2462_vm5 = vmand %vm1826_vm9, %vm1909_vm2  ;;  %v1129_v28 = vld [vmem:[%s2257_s2 + $0x50] sm:$0xff]  ;;  %v1130_v56 = vld [vmem:[%s2257_s2] sm:$0xff] }
 0x22e   :  { %1092 = vlog2.f32 %v630_v49  ;;  %v734_v48 = vsel %vm2445_vm0, %v670_v46, 0.0  ;;  %vm2453_vm0 = vnez %v2357_v55  ;;  %vm2458_vm10 = vmand %vm2456_vm4, %vm2457_vm7  ;;  %vm257_vm9 = vcmp.gt.f32.partialorder %v1129_v28, -0.5 }
 0x22f   :  { %1094 = vlog2.f32 %v631_v41  ;;  %756 = vadd.xlane.f32.xlu0 %v734_v48  ;;  %746 = vadd.xlane.f32.xlu1 %v729_v19  ;;  %v671_v27 = vsub.f32 %v1496_v29, %v647_v24  ;;  %vm2454_vm15 = vmand %vm2452_vm13, %vm2453_vm0  ;;  %v809_v45 = vpop.xlane.xlu0 %808  ;;  %vm247_vm2 = vcmp.gt.f32.partialorder %v1130_v56, -0.5  ;;  %vm248_vm0 = vcmp.gt.f32.partialorder %v1134_v44, -0.5 }
 0x230   :  { %v1085_v2 = vpop.eup %1084  ;;  %vm2465_vm1 = vmand %vm1980_vm6, %vm1962_vm12  ;;  %v811_v43 = vpop.xlane.xlu1 %810  ;;  %vm249_vm12 = vcmp.gt.f32.partialorder %v1128_v47, -0.5 }
 0x231   :  { %v1087_v9 = vpop.eup %1086  ;;  %v641_v26 = vmul.f32 0.6931472, %v1085_v2  ;;  %v735_v29 = vsel %vm2454_vm15, %v671_v27, 0.0 }
 0x232   :  { %v643_v42 = vmul.f32 0.6931472, %v1087_v9 }
 0x233   :  { %762 = vadd.xlane.f32.xlu1 %v737_v22  ;;  %v668_v21 = vsub.f32 %v1534_v59, %v641_v26  ;;  %v813_v34 = vpop.xlane.xlu0 %812  ;;  %v1131_v22 = vld [vmem:[%s2257_s2 + $0x18] sm:$0xff] }
 0x234   :  { %v1089_v38 = vpop.eup %1088  ;;  %v669_v0 = vsub.f32 %v1524_v58, %v643_v42  ;;  %v815_v10 = vpop.xlane.xlu1 %814  ;;  %1096 = vrcp.f32 %v813_v34  ;;  %vm250_vm6 = vcmp.gt.f32.partialorder %v1131_v22, -0.5  ;;  %v1142_v22 = vld [vmem:[%s2257_s2 + $0x68] sm:$0xff] }
 0x235   :  { %v1091_v57 = vpop.eup %1090  ;;  %v657_v7 = vmul.f32 0.6931472, %v1089_v38  ;;  %v732_v40 = vsel %vm2451_vm8, %v668_v21, 0.0  ;;  %vm2459_vm8 = vmand %vm1971_vm11, %vm2425_vm3  ;;  %vm904_vm11 = vcmask 7168  }
 0x236   :  { %v659_v35 = vmul.f32 0.6931472, %v1091_v57  ;;  %752 = vadd.xlane.f32.xlu0 %v732_v40  ;;  %v733_v58 = vsel %vm2458_vm10, %v669_v0, 0.0  ;;  %v1132_v40 = vld [vmem:[%s2257_s2 + $0x40] sm:$0xff] }
 0x237   :  { %758 = vadd.xlane.f32.xlu1 %v735_v29  ;;  %v676_v59 = vsub.f32 %v1549_v32, %v657_v7  ;;  %vm255_vm3 = vcmp.gt.f32.partialorder %v1132_v40, -0.5 }
 0x238   :  { %v1093_v36 = vpop.eup %1092  ;;  %v677_v33 = vsub.f32 %v1542_v20, %v659_v35  ;;  %v817_v62 = vpop.xlane.xlu0 %816 }
 0x239   :  { %v1095_v31 = vpop.eup %1094  ;;  %v661_v25 = vmul.f32 0.6931472, %v1093_v36  ;;  %v740_v37 = vsel %vm2455_vm14, %v676_v59, 0.0  ;;  %v2128_v63 = vpop.xlane.xlu1 %818  ;;  %v1133_v36 = vld [vmem:[%s2257_s2 + $0x58] sm:$0xff] }
 0x23a   :  { %v663_v30 = vmul.f32 0.6931472, %v1095_v31  ;;  %768 = vadd.xlane.f32.xlu0 %v740_v37  ;;  %v741_v1 = vsel %vm2462_vm5, %v677_v33, 0.0  ;;  %vm258_vm13 = vcmp.gt.f32.partialorder %v1133_v36, -0.5 }
 0x23b   :  { %754 = vadd.xlane.f32.xlu1 %v733_v58  ;;  %v678_v32 = vsub.f32 %v1516_v17, %v661_v25 }
 0x23c   :  { %v679_v39 = vsub.f32 %v1510_v18, %v663_v30  ;;  %v821_v51 = vpop.xlane.xlu0 %820 }
 0x23d   :  { %v742_v55 = vsel %vm2459_vm8, %v678_v32, 0.0  ;;  %v823_v4 = vpop.xlane.xlu1 %822 }
 0x23e   :  { %772 = vadd.xlane.f32.xlu0 %v742_v55  ;;  %v743_v17 = vsel %vm2465_vm1, %v679_v39, 0.0  ;;  %v1097_v6 = vpop.eup %1096  ;;  %vm260_vm1 = vcmp.gt.f32.partialorder %v1142_v22, -0.5 }
 0x23f   :  { %770 = vadd.xlane.f32.xlu1 %v741_v1  ;;  %v1135_v1 = vld [vmem:[%s2257_s2 + $0x30] sm:$0xff] }
 0x240   :  { %vm253_vm15 = vcmp.gt.f32.partialorder %v1135_v1, -0.5 }
 0x241   :  { %v825_v8 = vpop.xlane.xlu0 %824  ;;  %v827_v18 = vpop.xlane.xlu1 %826 }
 0x243   :  { %774 = vadd.xlane.f32.xlu1 %v743_v17 }
 0x245   :  { %v829_v54 = vpop.xlane.xlu0 %828  ;;  %v831_v12 = vpop.xlane.xlu1 %830 }
 0x246   :  { %1098 = vrcp.f32 %v829_v54 }
 0x247   :  { %1100 = vrcp.f32 %v809_v45 }
 0x248   :  { %1102 = vrcp.f32 %v815_v10 }
 0x249   :  { %v2134_v13 = vpop.xlane.xlu1 %834  ;;  %1104 = vrcp.f32 %v825_v8 }
 0x24a   :  { %v2130_v5 = vpop.xlane.xlu0 %832  ;;  %1106 = vrcp.f32 %v831_v12 }
 0x24b   :  { %1108 = vrcp.f32 %v811_v43 }
 0x24c   :  { %1110 = vrcp.f32 %v821_v51 }
 0x24d   :  { %v2142_v14 = vpop.xlane.xlu1 %838  ;;  %1112 = vrcp.f32 %v827_v18  ;;  %v1137_v18 = vld [vmem:[%s2257_s2 + $0x20] sm:$0xff] }
 0x24e   :  { %v2132_v15 = vpop.xlane.xlu0 %836  ;;  %1114 = vrcp.f32 %v817_v62  ;;  %v1136_v62 = vld [vmem:[%s2257_s2 + $0x48] sm:$0xff]  ;;  %vm251_vm4 = vcmp.gt.f32.partialorder %v1137_v18, -0.5 }
 0x24f   :  { %1116 = vrcp.f32 %v823_v4  ;;  %vm256_vm14 = vcmp.gt.f32.partialorder %v1136_v62, -0.5 }
 0x250   :  { %v1099_v3 = vpop.eup %1098  ;;  %1118 = vrcp.f32 %v2130_v5 }
 0x251   :  { %v1101_v41 = vpop.eup %1100  ;;  %1120 = vrcp.f32 %v2128_v63 }
 0x252   :  { %v1103_v48 = vpop.eup %1102  ;;  %1122 = vrcp.f32 %v2132_v15  ;;  %v1138_v15 = vld [vmem:[%s2257_s2 + $0x38] sm:$0xff] }
 0x253   :  { %v1105_v42 = vpop.eup %1104  ;;  %1124 = vrcp.f32 %v2134_v13  ;;  %vm254_vm7 = vcmp.gt.f32.partialorder %v1138_v15, -0.5 }
 0x254   :  { %v1107_v7 = vpop.eup %1106  ;;  %1126 = vrcp.f32 %v2142_v14  ;;  %v1140_v14 = vld [vmem:[%s2257_s2 + $0x28] sm:$0xff] }
 0x255   :  { %v1109_v31 = vpop.eup %1108  ;;  %vm252_vm8 = vcmp.gt.f32.partialorder %v1140_v14, -0.5 }
 0x256   :  { %v1111_v30 = vpop.eup %1110 }
 0x257   :  { %v1113_v11 = vpop.eup %1112 }
 0x258   :  { %v1115_v10 = vpop.eup %1114 }
 0x259   :  { %v1117_v8 = vpop.eup %1116 }
 0x25a   :  { %v1119_v13 = vpop.eup %1118 }
 0x25b   :  { %v1121_v47 = vpop.eup %1120 }
 0x2aa   :  { %v749_v60 = vpop.xlane.xlu0 %748 }
 0x2ab   :  { %v845_v16 = vmul.f32 %v1097_v6, %v749_v60 }
 0x2ad   :  { %v874_v52 = vmul.f32 -1.4285715, %v845_v16 }
 0x2ae   :  { %v765_v61 = vpop.xlane.xlu0 %764 }
 0x2af   :  { %v890_v53 = vsel %vm249_vm12, %v874_v52, 0.0  ;;  %v861_v23 = vmul.f32 %v1099_v3, %v765_v61 }
 0x2b0   :  { %907 = vst.msk [vmem:[%s2259_s4 + $0x10] sm:$0xff] %vm904_vm11, %v890_v53  ;;  %v1139_v53 = vld [vmem:[%s2257_s2 + $0x60] sm:$0xff] }
 0x2b1   :  { %v882_v49 = vmul.f32 -1.4285715, %v861_v23  ;;  %vm259_vm10 = vcmp.gt.f32.partialorder %v1139_v53, -0.5 }
 0x2b2   :  { %v745_v46 = vpop.xlane.xlu0 %744 }
 0x2b3   :  { %v898_v19 = vsel %vm257_vm9, %v882_v49, 0.0  ;;  %v841_v24 = vmul.f32 %v1101_v41, %v745_v46  ;;  %v1123_v41 = vpop.eup %1122 }
 0x2b4   :  { %915 = vst.msk [vmem:[%s2259_s4 + $0x50] sm:$0xff] %vm904_vm11, %v898_v19  ;;  %v751_v2 = vpop.xlane.xlu1 %750 }
 0x2b5   :  { %v872_v9 = vmul.f32 -1.4285715, %v841_v24  ;;  %v847_v26 = vmul.f32 %v1103_v48, %v751_v2  ;;  %v1125_v24 = vpop.eup %1124 }
 0x2b6   :  { %v761_v27 = vpop.xlane.xlu0 %760 }
 0x2b7   :  { %v888_v21 = vsel %vm247_vm2, %v872_v9, 0.0  ;;  %v875_v38 = vmul.f32 -1.4285715, %v847_v26  ;;  %v857_v57 = vmul.f32 %v1105_v42, %v761_v27  ;;  %v1141_v9 = vld [vmem:[%s2257_s2 + $0x70] sm:$0xff] }
 0x2b8   :  { %905 = vst.msk [vmem:[%s2259_s4] sm:$0xff] %vm904_vm11, %v888_v21  ;;  %v767_v35 = vpop.xlane.xlu1 %766  ;;  %vm261_vm5 = vcmp.gt.f32.partialorder %v1141_v9, -0.5 }
 0x2b9   :  { %v891_v29 = vsel %vm250_vm6, %v875_v38, 0.0  ;;  %v880_v0 = vmul.f32 -1.4285715, %v857_v57  ;;  %v863_v59 = vmul.f32 %v1107_v7, %v767_v35  ;;  %v1127_v38 = vpop.eup %1126 }
 0x2ba   :  { %908 = vst.msk [vmem:[%s2259_s4 + $0x18] sm:$0xff] %vm904_vm11, %v891_v29  ;;  %v1143_v29 = vld [vmem:[%s2257_s2 + $0x78] sm:$0xff] }
 0x2bb   :  { %v896_v25 = vsel %vm255_vm3, %v880_v0, 0.0  ;;  %v883_v37 = vmul.f32 -1.4285715, %v863_v59  ;;  %vm262_vm12 = vcmp.gt.f32.partialorder %v1143_v29, -0.5 }
 0x2bc   :  { %913 = vst.msk [vmem:[%s2259_s4 + $0x40] sm:$0xff] %vm904_vm11, %v896_v25  ;;  %v757_v58 = vpop.xlane.xlu0 %756  ;;  %v747_v33 = vpop.xlane.xlu1 %746 }
 0x2bd   :  { %v899_v32 = vsel %vm258_vm13, %v883_v37, 0.0  ;;  %v853_v55 = vmul.f32 %v1111_v30, %v757_v58  ;;  %v843_v50 = vmul.f32 %v1109_v31, %v747_v33 }
 0x2be   :  { %916 = vst.msk [vmem:[%s2259_s4 + $0x58] sm:$0xff] %vm904_vm11, %v899_v32 }
 0x2bf   :  { %v878_v39 = vmul.f32 -1.4285715, %v853_v55  ;;  %v873_v20 = vmul.f32 -1.4285715, %v843_v50 }
 0x2c0   :  { %v763_v17 = vpop.xlane.xlu1 %762 }
 0x2c1   :  { %v894_v45 = vsel %vm253_vm15, %v878_v39, 0.0  ;;  %v889_v34 = vsel %vm248_vm0, %v873_v20, 0.0  ;;  %v859_v43 = vmul.f32 %v1113_v11, %v763_v17 }
 0x2c2   :  { %911 = vst.msk [vmem:[%s2259_s4 + $0x30] sm:$0xff] %vm904_vm11, %v894_v45  ;;  %906 = vst.msk [vmem:[%s2259_s4 + $0x8] sm:$0xff] %vm904_vm11, %v889_v34 }
 0x2c3   :  { %v881_v51 = vmul.f32 -1.4285715, %v859_v43  ;;  %v753_v63 = vpop.xlane.xlu0 %752 }
 0x2c4   :  { %v849_v4 = vmul.f32 %v1115_v10, %v753_v63  ;;  %v759_v54 = vpop.xlane.xlu1 %758 }
 0x2c5   :  { %v897_v5 = vsel %vm256_vm14, %v881_v51, 0.0  ;;  %v855_v12 = vmul.f32 %v1117_v8, %v759_v54 }
 0x2c6   :  { %914 = vst.msk [vmem:[%s2259_s4 + $0x48] sm:$0xff] %vm904_vm11, %v897_v5  ;;  %v876_v6 = vmul.f32 -1.4285715, %v849_v4 }
 0x2c7   :  { %v879_v60 = vmul.f32 -1.4285715, %v855_v12  ;;  %v769_v16 = vpop.xlane.xlu0 %768 }
 0x2c8   :  { %v892_v52 = vsel %vm251_vm4, %v876_v6, 0.0  ;;  %v865_v3 = vmul.f32 %v1119_v13, %v769_v16  ;;  %v755_v61 = vpop.xlane.xlu1 %754 }
 0x2c9   :  { %909 = vst.msk [vmem:[%s2259_s4 + $0x20] sm:$0xff] %vm904_vm11, %v892_v52  ;;  %v895_v23 = vsel %vm254_vm7, %v879_v60, 0.0  ;;  %v851_v28 = vmul.f32 %v1121_v47, %v755_v61 }
 0x2ca   :  { %912 = vst.msk [vmem:[%s2259_s4 + $0x38] sm:$0xff] %vm904_vm11, %v895_v23  ;;  %v884_v49 = vmul.f32 -1.4285715, %v865_v3 }
 0x2cb   :  { %v877_v46 = vmul.f32 -1.4285715, %v851_v28  ;;  %v773_v19 = vpop.xlane.xlu0 %772 }
 0x2cc   :  { %v900_v48 = vsel %vm259_vm10, %v884_v49, 0.0  ;;  %v869_v56 = vmul.f32 %v1123_v41, %v773_v19  ;;  %v771_v2 = vpop.xlane.xlu1 %770 }
 0x2cd   :  { %917 = vst.msk [vmem:[%s2259_s4 + $0x60] sm:$0xff] %vm904_vm11, %v900_v48  ;;  %v893_v26 = vsel %vm252_vm8, %v877_v46, 0.0  ;;  %v867_v42 = vmul.f32 %v1125_v24, %v771_v2 }
 0x2ce   :  { %910 = vst.msk [vmem:[%s2259_s4 + $0x28] sm:$0xff] %vm904_vm11, %v893_v26  ;;  %v886_v27 = vmul.f32 -1.4285715, %v869_v56 }
 0x2cf   :  { %v885_v21 = vmul.f32 -1.4285715, %v867_v42 }
 0x2d0   :  { %v902_v57 = vsel %vm261_vm5, %v886_v27, 0.0  ;;  %v775_v7 = vpop.xlane.xlu1 %774 }
 0x2d1   :  { %919 = vst.msk [vmem:[%s2259_s4 + $0x70] sm:$0xff] %vm904_vm11, %v902_v57  ;;  %v901_v40 = vsel %vm260_vm1, %v885_v21, 0.0  ;;  %v871_v35 = vmul.f32 %v1127_v38, %v775_v7 }
 0x2d2   :  { %918 = vst.msk [vmem:[%s2259_s4 + $0x68] sm:$0xff] %vm904_vm11, %v901_v40 }
 0x2d3   :  { %v887_v0 = vmul.f32 -1.4285715, %v871_v35 }
 0x2d5   :  { %v903_v59 = vsel %vm262_vm12, %v887_v0, 0.0 }
 0x2d6   :  { %920 = vst.msk [vmem:[%s2259_s4 + $0x78] sm:$0xff] %vm904_vm11, %v903_v59 }

</bundles_post_ra>
